<compile_context>
chip_gen: v6e
topology: v6e:2x2x1
jax: 0.10.0
libtpu: 0.0.40
codegen_flags: <defaults>
</compile_context>

<pallas_src>
import functools

import jax
import jax.numpy as jnp
from jax.experimental import pallas as pl
from jax.experimental.pallas import tpu as pltpu

LOG_STD_MAX = 2.0
LOG_STD_MIN = -5.0
_LOG_STD_SCALE = 0.5 * (LOG_STD_MAX - LOG_STD_MIN)   # 3.5
_LOG_STD_SHIFT = LOG_STD_MIN + _LOG_STD_SCALE        # -1.5

_TB_MAX = 2048   # max batch-tile rows (VMEM use stays << scoped limit)


def _round_up(n, m):
    return ((n + m - 1) // m) * m


def actor_kernel(x_ref, w1_ref, b1_ref, w2_ref, b2_ref, wh_ref, bh_ref,
                 out_ref, *, half):
    # fc1 + relu  (MXU matmul, f32 accumulate; bias/activation math stays f32)
    h1 = jnp.dot(x_ref[...], w1_ref[...], preferred_element_type=jnp.float32)
    h1 = jnp.maximum(h1 + b1_ref[...], 0.0)

    # fc2 + relu
    h2 = jnp.dot(h1.astype(w2_ref.dtype), w2_ref[...],
                 preferred_element_type=jnp.float32)
    h2 = jnp.maximum(h2 + b2_ref[...], 0.0)

    # fused heads matmul: lanes [0, half) = mean, lanes [half, 2*half) = log_std
    heads = jnp.dot(h2.astype(wh_ref.dtype), wh_ref[...],
                    preferred_element_type=jnp.float32)
    heads = heads + bh_ref[...]

    # folded tanh affine applied only to the log_std lanes (column mask; the
    # extra tanh lanes go to the EUP slot and are essentially free).
    col = jax.lax.broadcasted_iota(jnp.int32, heads.shape, 1)
    log_std = _LOG_STD_SCALE * jnp.tanh(heads) + _LOG_STD_SHIFT
    out = jnp.where(col >= half, log_std, heads)
    out_ref[...] = out.astype(out_ref.dtype)


def prepare_params(params, use_bf16=True):
    """Repack params for the kernel (done once, on the host):
       - weights stored [in, out] (x @ W); biases kept [1, out] f32
       - obs_dim zero-padded to a multiple of 16 (bf16) / 8 (f32) - exact
       - mean/log_std heads fused into a single [hidden, 2*half] block,
         half = 64 for act_dim <= 64, so the whole head output is 128 lanes
       - matmul operands optionally cast to bf16 (f32 accumulation)."""
    w_dtype = jnp.bfloat16 if use_bf16 else jnp.float32
    obs_dim, hidden = params["w1"].shape
    act_dim = params["wm"].shape[1]
    obs_pad = _round_up(obs_dim, 16 if use_bf16 else 8)

    half = max(64, _round_up(act_dim, 64))   # per-head lane slot; 2*half % 128 == 0
    heads_cols = 2 * half

    w1 = jnp.zeros((obs_pad, hidden), jnp.float32).at[:obs_dim].set(params["w1"])
    wh = (jnp.zeros((hidden, heads_cols), jnp.float32)
          .at[:, :act_dim].set(params["wm"])
          .at[:, half:half + act_dim].set(params["ws"]))
    bh = (jnp.zeros((1, heads_cols), jnp.float32)
          .at[:, :act_dim].set(params["bm"])
          .at[:, half:half + act_dim].set(params["bs"]))

    return dict(
        obs_dim=obs_dim, act_dim=act_dim, hidden=hidden,
        w1=w1.astype(w_dtype), b1=params["b1"].astype(jnp.float32),
        w2=params["w2"].astype(w_dtype), b2=params["b2"].astype(jnp.float32),
        wh=wh.astype(w_dtype), bh=bh.astype(jnp.float32))


@functools.partial(jax.jit, static_argnames=("act_dim",))
def _actor_forward(x, w1, b1, w2, b2, wh, bh, *, act_dim):
    B, obs_dim = x.shape
    obs_pad, hidden = w1.shape
    heads_cols = wh.shape[1]
    half = heads_cols // 2
    w_dtype = w1.dtype

    # Batch tiling: one padded tile for small B; at large B use big tiles
    # (amortize the ~0.35 us/step grid overhead) while guaranteeing >= 2 grid
    # steps so the "parallel" axis can shard across both v7x TensorCores.
    if B < 256:
        tb = _round_up(B, 8)
    else:
        tb = min(_TB_MAX, _round_up(-(-B // 2), 8))
    b_pad = _round_up(B, tb)
    grid = (b_pad // tb,)

    # pad/cast fused into this jit, not separate eager dispatches
    x_p = (jnp.zeros((b_pad, obs_pad), jnp.float32)
           .at[:B, :obs_dim].set(x.astype(jnp.float32))
           .astype(w_dtype))

    flops = 2 * b_pad * (obs_pad * hidden + hidden * hidden + hidden * heads_cols)
    bytes_accessed = (
        x_p.size * x_p.dtype.itemsize
        + w1.size * w1.dtype.itemsize
        + w2.size * w2.dtype.itemsize
        + wh.size * wh.dtype.itemsize
        + (b1.size + b2.size + bh.size) * 4
        + b_pad * heads_cols * jnp.dtype(w_dtype).itemsize)

    out = pl.pallas_call(
        functools.partial(actor_kernel, half=half),
        out_shape=jax.ShapeDtypeStruct((b_pad, heads_cols), w_dtype),
        grid=grid,
        in_specs=[
            pl.BlockSpec((tb, obs_pad), lambda i: (i, 0)),        # x tile
            pl.BlockSpec((obs_pad, hidden), lambda i: (0, 0)),    # W1 (resident)
            pl.BlockSpec((1, hidden), lambda i: (0, 0)),          # b1
            pl.BlockSpec((hidden, hidden), lambda i: (0, 0)),     # W2
            pl.BlockSpec((1, hidden), lambda i: (0, 0)),          # b2
            pl.BlockSpec((hidden, heads_cols), lambda i: (0, 0)), # fused heads W
            pl.BlockSpec((1, heads_cols), lambda i: (0, 0)),      # fused heads b
        ],
        out_specs=pl.BlockSpec((tb, heads_cols), lambda i: (i, 0)),
        compiler_params=pltpu.CompilerParams(
            dimension_semantics=("parallel",)),
        cost_estimate=pl.CostEstimate(
            flops=flops,
            transcendentals=b_pad * heads_cols,
            bytes_accessed=bytes_accessed),
    )(x_p, w1, b1, w2, b2, wh, bh)

    # split heads + cast back to f32 (fused into the jit, trivial size)
    mean = out[:B, :act_dim].astype(jnp.float32)
    log_std = out[:B, half:half + act_dim].astype(jnp.float32)
    return mean, log_std


def actor_forward(x, prep):
    """x: [B, obs_dim] f32. Returns (mean, log_std), each [B, act_dim] f32."""
    return _actor_forward(x, prep["w1"], prep["b1"], prep["w2"], prep["b2"],
                          prep["wh"], prep["bh"], act_dim=prep["act_dim"])


def init_params(key, obs_dim, act_dim, hidden=256):
    """Deterministic init mimicking torch.nn.Linear default (U(-1/sqrt(fan_in), +))."""
    def linear(k, fan_in, fan_out):
        kw, kb = jax.random.split(k)
        bound = 1.0 / jnp.sqrt(fan_in)
        w = jax.random.uniform(kw, (fan_in, fan_out), jnp.float32, -bound, bound)
        b = jax.random.uniform(kb, (1, fan_out), jnp.float32, -bound, bound)
        return w, b

    k1, k2, k3, k4 = jax.random.split(key, 4)
    w1, b1 = linear(k1, obs_dim, hidden)
    w2, b2 = linear(k2, hidden, hidden)
    wm, bm = linear(k3, hidden, act_dim)
    ws, bs = linear(k4, hidden, act_dim)
    return dict(w1=w1, b1=b1, w2=w2, b2=b2, wm=wm, bm=bm, ws=ws, bs=bs)


def actor_forward_ref(x, p):
    h1 = jax.nn.relu(x @ p["w1"] + p["b1"])
    h2 = jax.nn.relu(h1 @ p["w2"] + p["b2"])
    mean = h2 @ p["wm"] + p["bm"]
    log_std = jnp.tanh(h2 @ p["ws"] + p["bs"])
    log_std = LOG_STD_MIN + 0.5 * (LOG_STD_MAX - LOG_STD_MIN) * (log_std + 1.0)
    return mean, log_std


# TODO(synk): get_action (Normal rsample + tanh squash + log_prob) could be fused
# into this kernel for rollout loops; only forward() is implemented here.

if __name__ == "__main__":
    key = jax.random.PRNGKey(0)
    k_params, k_x1, k_x2 = jax.random.split(key, 3)

    batch, obs_dim, act_dim = 8, 17, 6   # small env-like shapes
    params = init_params(k_params, obs_dim, act_dim)
    x = jax.random.normal(k_x1, (batch, obs_dim), jnp.float32)
    mean_ref, log_std_ref = actor_forward_ref(x, params)

    # ---- f32-operand path: exact parity with the reference ----
    prep_f32 = prepare_params(params, use_bf16=False)
    mean, log_std = actor_forward(x, prep_f32)
    jax.block_until_ready((mean, log_std))
    assert mean.shape == (batch, act_dim) and log_std.shape == (batch, act_dim)
    assert jnp.allclose(mean, mean_ref, atol=1e-4, rtol=1e-4)
    assert jnp.allclose(log_std, log_std_ref, atol=1e-4, rtol=1e-4)
    assert bool(jnp.all(log_std >= LOG_STD_MIN)) and bool(jnp.all(log_std <= LOG_STD_MAX))

    # ---- bf16-operand path (f32 accumulation, bf16 output): relaxed tolerance ----
    prep_bf16 = prepare_params(params, use_bf16=True)
    mean_b, log_std_b = actor_forward(x, prep_bf16)
    jax.block_until_ready((mean_b, log_std_b))
    assert jnp.allclose(mean_b, mean_ref, atol=3e-2, rtol=3e-2)
    assert jnp.allclose(log_std_b, log_std_ref, atol=3e-2, rtol=3e-2)
    assert bool(jnp.all(log_std_b >= LOG_STD_MIN)) and bool(jnp.all(log_std_b <= LOG_STD_MAX))

    # ---- batched path: grid over batch (2 tiles, parallel axis for megacore) ----
    big_b = 320
    xb = jax.random.normal(k_x2, (big_b, obs_dim), jnp.float32)
    mean_big, log_std_big = actor_forward(xb, prep_f32)
    jax.block_until_ready((mean_big, log_std_big))
    mean_big_ref, log_std_big_ref = actor_forward_ref(xb, params)
    assert mean_big.shape == (big_b, act_dim) and log_std_big.shape == (big_b, act_dim)
    assert jnp.allclose(mean_big, mean_big_ref, atol=1e-4, rtol=1e-4)
    assert jnp.allclose(log_std_big, log_std_big_ref, atol=1e-4, rtol=1e-4)

    print("KERNEL_OK")
</pallas_src>

<mosaic_0001>
module attributes {stable_mosaic.version = 11 : i64} {
  func.func @actor_kernel(%arg0: i32, %arg1: memref<8x24xf32, #tpu.memory_space<vmem>>, %arg2: memref<24x256xf32, #tpu.memory_space<vmem>>, %arg3: memref<1x256xf32, #tpu.memory_space<vmem>>, %arg4: memref<256x256xf32, #tpu.memory_space<vmem>>, %arg5: memref<1x256xf32, #tpu.memory_space<vmem>>, %arg6: memref<256x128xf32, #tpu.memory_space<vmem>>, %arg7: memref<1x128xf32, #tpu.memory_space<vmem>>, %arg8: memref<8x128xf32, #tpu.memory_space<vmem>>) attributes {dimension_semantics = [#tpu.dimension_semantics<parallel>], iteration_bounds = array<i64: 1>, scalar_prefetch = 0 : i64, scratch_operands = 0 : i64, tpu.core_type = #tpu.core_type<tc>, window_params = [{transform_indices = @transform_0, window_bounds = array<i64: 8, 24>}, {pipeline_mode = #tpu.pipeline_mode<synchronous>, transform_indices = @transform_1, window_bounds = array<i64: 24, 256>}, {pipeline_mode = #tpu.pipeline_mode<synchronous>, transform_indices = @transform_2, window_bounds = array<i64: 1, 256>}, {pipeline_mode = #tpu.pipeline_mode<synchronous>, transform_indices = @transform_3, window_bounds = array<i64: 256, 256>}, {pipeline_mode = #tpu.pipeline_mode<synchronous>, transform_indices = @transform_4, window_bounds = array<i64: 1, 256>}, {pipeline_mode = #tpu.pipeline_mode<synchronous>, transform_indices = @transform_5, window_bounds = array<i64: 256, 128>}, {pipeline_mode = #tpu.pipeline_mode<synchronous>, transform_indices = @transform_6, window_bounds = array<i64: 1, 128>}, {transform_indices = @transform_7, window_bounds = array<i64: 8, 128>}]} {
    %c0 = arith.constant 0 : index
    %c0_0 = arith.constant 0 : index
    %0 = vector.load %arg1[%c0, %c0_0] : memref<8x24xf32, #tpu.memory_space<vmem>>, vector<8x24xf32>
    %c0_1 = arith.constant 0 : index
    %c0_2 = arith.constant 0 : index
    %1 = vector.load %arg2[%c0_1, %c0_2] : memref<24x256xf32, #tpu.memory_space<vmem>>, vector<24x256xf32>
    %cst = arith.constant dense<0.000000e+00> : vector<8x256xf32>
    %2 = tpu.matmul %0, %1, %cst {dimension_numbers = #tpu.dot_dimension_numbers<[1], [0], [0], [1], [0, 0, 1, 1], [], []>} : vector<8x24xf32>, vector<24x256xf32>, vector<8x256xf32> -> vector<8x256xf32>
    %c0_3 = arith.constant 0 : index
    %c0_4 = arith.constant 0 : index
    %3 = vector.load %arg3[%c0_3, %c0_4] : memref<1x256xf32, #tpu.memory_space<vmem>>, vector<1x256xf32>
    %4 = vector.broadcast %3 : vector<1x256xf32> to vector<8x256xf32>
    %5 = arith.addf %2, %4 : vector<8x256xf32>
    %cst_5 = arith.constant 0.000000e+00 : f32
    %6 = vector.broadcast %cst_5 : f32 to vector<8x256xf32>
    %7 = arith.maximumf %5, %6 : vector<8x256xf32>
    %c0_6 = arith.constant 0 : index
    %c0_7 = arith.constant 0 : index
    %8 = vector.load %arg4[%c0_6, %c0_7] : memref<256x256xf32, #tpu.memory_space<vmem>>, vector<256x256xf32>
    %cst_8 = arith.constant dense<0.000000e+00> : vector<8x256xf32>
    %9 = tpu.matmul %7, %8, %cst_8 {dimension_numbers = #tpu.dot_dimension_numbers<[1], [0], [0], [1], [0, 0, 1, 1], [], []>} : vector<8x256xf32>, vector<256x256xf32>, vector<8x256xf32> -> vector<8x256xf32>
    %c0_9 = arith.constant 0 : index
    %c0_10 = arith.constant 0 : index
    %10 = vector.load %arg5[%c0_9, %c0_10] : memref<1x256xf32, #tpu.memory_space<vmem>>, vector<1x256xf32>
    %11 = vector.broadcast %10 : vector<1x256xf32> to vector<8x256xf32>
    %12 = arith.addf %9, %11 : vector<8x256xf32>
    %cst_11 = arith.constant 0.000000e+00 : f32
    %13 = vector.broadcast %cst_11 : f32 to vector<8x256xf32>
    %14 = arith.maximumf %12, %13 : vector<8x256xf32>
    %c0_12 = arith.constant 0 : index
    %c0_13 = arith.constant 0 : index
    %15 = vector.load %arg6[%c0_12, %c0_13] : memref<256x128xf32, #tpu.memory_space<vmem>>, vector<256x128xf32>
    %cst_14 = arith.constant dense<0.000000e+00> : vector<8x128xf32>
    %16 = tpu.matmul %14, %15, %cst_14 {dimension_numbers = #tpu.dot_dimension_numbers<[1], [0], [0], [1], [0, 0, 1, 1], [], []>} : vector<8x256xf32>, vector<256x128xf32>, vector<8x128xf32> -> vector<8x128xf32>
    %c0_15 = arith.constant 0 : index
    %c0_16 = arith.constant 0 : index
    %17 = vector.load %arg7[%c0_15, %c0_16] : memref<1x128xf32, #tpu.memory_space<vmem>>, vector<1x128xf32>
    %18 = vector.broadcast %17 : vector<1x128xf32> to vector<8x128xf32>
    %19 = arith.addf %16, %18 : vector<8x128xf32>
    %20 = tpu.iota {dimensions = array<i32: 1>} : vector<8x128xi32>
    %21 = math.tanh %19 : vector<8x128xf32>
    %cst_17 = arith.constant 3.500000e+00 : f32
    %22 = vector.broadcast %cst_17 : f32 to vector<8x128xf32>
    %23 = arith.mulf %22, %21 : vector<8x128xf32>
    %cst_18 = arith.constant -1.500000e+00 : f32
    %24 = vector.broadcast %cst_18 : f32 to vector<8x128xf32>
    %25 = arith.addf %23, %24 : vector<8x128xf32>
    %c64_i32 = arith.constant 64 : i32
    %26 = vector.broadcast %c64_i32 : i32 to vector<8x128xi32>
    %27 = arith.cmpi sge, %20, %26 : vector<8x128xi32>
    %28 = arith.select %27, %25, %19 : vector<8x128xi1>, vector<8x128xf32>
    %c0_19 = arith.constant 0 : index
    %c0_20 = arith.constant 0 : index
    %29 = vector.load %arg8[%c0_19, %c0_20] : memref<8x128xf32, #tpu.memory_space<vmem>>, vector<8x128xf32>
    tpu.vector_store %arg8[%c0_19, %c0_20], %28 {strides = array<i32>} : memref<8x128xf32, #tpu.memory_space<vmem>>, vector<8x128xf32>,
    return
  }
  func.func @transform_0(%arg0: i32) -> (i32, i32) {
    %c0_i32 = arith.constant 0 : i32
    %c0_i32_0 = arith.constant 0 : i32
    return %arg0, %c0_i32 : i32, i32
  }
  func.func @transform_1(%arg0: i32) -> (i32, i32) {
    %c0_i32 = arith.constant 0 : i32
    %c0_i32_0 = arith.constant 0 : i32
    %c0_i32_1 = arith.constant 0 : i32
    return %c0_i32, %c0_i32_0 : i32, i32
  }
  func.func @transform_2(%arg0: i32) -> (i32, i32) {
    %c0_i32 = arith.constant 0 : i32
    %c0_i32_0 = arith.constant 0 : i32
    %c0_i32_1 = arith.constant 0 : i32
    return %c0_i32, %c0_i32_0 : i32, i32
  }
  func.func @transform_3(%arg0: i32) -> (i32, i32) {
    %c0_i32 = arith.constant 0 : i32
    %c0_i32_0 = arith.constant 0 : i32
    %c0_i32_1 = arith.constant 0 : i32
    return %c0_i32, %c0_i32_0 : i32, i32
  }
  func.func @transform_4(%arg0: i32) -> (i32, i32) {
    %c0_i32 = arith.constant 0 : i32
    %c0_i32_0 = arith.constant 0 : i32
    %c0_i32_1 = arith.constant 0 : i32
    return %c0_i32, %c0_i32_0 : i32, i32
  }
  func.func @transform_5(%arg0: i32) -> (i32, i32) {
    %c0_i32 = arith.constant 0 : i32
    %c0_i32_0 = arith.constant 0 : i32
    %c0_i32_1 = arith.constant 0 : i32
    return %c0_i32, %c0_i32_0 : i32, i32
  }
  func.func @transform_6(%arg0: i32) -> (i32, i32) {
    %c0_i32 = arith.constant 0 : i32
    %c0_i32_0 = arith.constant 0 : i32
    %c0_i32_1 = arith.constant 0 : i32
    return %c0_i32, %c0_i32_0 : i32, i32
  }
  func.func @transform_7(%arg0: i32) -> (i32, i32) {
    %c0_i32 = arith.constant 0 : i32
    %c0_i32_0 = arith.constant 0 : i32
    return %arg0, %c0_i32 : i32, i32
  }
}

</mosaic_0001>

<bundles_post_ra>
// kernel: _actor_forward.1
= control target key start
LH: loop header
LB: loop body
LE: loop exit
PB: predicated region body
PF: predicated region fallthrough
CT: control target
= control target key end

     0   :  { %12 = vsyncpa [#allocation3], 0  ;;  %s618_s0 = inlined_call_operand.vmem [shape: f32[8,24], index: 0, kind: input, shape index: {}]   ;;  %s619_s1 = inlined_call_operand.hbm [shape: f32[24,256], index: 1, kind: input, shape index: {}]   ;;  %s620_s2 = inlined_call_operand.vmem [shape: f32[1,256], index: 2, kind: input, shape index: {}]   ;;  %s621_s3 = inlined_call_operand.hbm [shape: f32[256,256], index: 3, kind: input, shape index: {}]   ;;  %s622_s4 = inlined_call_operand.vmem [shape: f32[1,256], index: 4, kind: input, shape index: {}]   ;;  %s623_s5 = inlined_call_operand.hbm [shape: f32[256,128], index: 5, kind: input, shape index: {}]   ;;  %s624_s6 = inlined_call_operand.vmem [shape: f32[1,128], index: 6, kind: input, shape index: {}]   ;;  %s625_s7 = inlined_call_operand.vmem [shape: f32[8,128], index: 7, kind: output, shape index: {}]  }
   0x1   :  { %13 = vsyncpa [#allocation5], 0  ;;  %s546_s24 = smov [#allocation4]   ;;  %s547_s26 = smov [#allocation2]  }
   0x2   :  { %s35_s25 = sshll.u32 %s546_s24, 4  ;;  %s21_s27 = sshll.u32 %s547_s26, 4  ;;  %s36_s25 = int_to_ptr.vmem [resolvable:$true] %s35_s25  ;;  %s22_s27 = int_to_ptr.vmem [resolvable:$true] %s21_s27 }
   0x3   :  { %s490_s28 = scalar_lea.vmem %s36_s25, 8192  ;;  %p495_p1 = scmp.lt.s32.totalorder %s36_s25, %s36_s25 }
   0x4   :  { %p491_p0 = scmp.ne.s32.totalorder %s36_s25, %s490_s28  ;;  %p496_p2 = scmp.lt.s32.totalorder %s490_s28, %s490_s28 }
   0x6   :  { %p497_p3 = por %p496_p2, %p495_p1 }
   0x8   :  { %p498_p4 = pnand %p497_p3, %p491_p0 }
   0xa   :  { %501 = shalt.err (!%p498_p4)
}
   0xb   :  { %s548_s29 = smov 256   ;;  %s549_s30 = smov 16  }
   0xc   :  { %41 = dma.hbm_to_vmem [thread:$0]  %s621_s3, 8192, %s36_s25, [#allocation5], %s548_s29, %s548_s29, %s549_s30  }
   0xd   :  { %s510_s10 = scalar_lea.vmem %s22_s27, 768  ;;  %p515_p6 = scmp.lt.s32.totalorder %s22_s27, %s22_s27 }
   0xe   :  { %p511_p5 = scmp.ne.s32.totalorder %s22_s27, %s510_s10  ;;  %p516_p7 = scmp.lt.s32.totalorder %s510_s10, %s510_s10 }
  0x10   :  { %p517_p8 = por %p516_p7, %p515_p6 }
  0x12   :  { %p518_p9 = pnand %p517_p8, %p511_p5 }
  0x14   :  { %521 = shalt.err (!%p518_p9)
}
  0x15   :  { %27 = dma.hbm_to_vmem [thread:$0]  %s619_s1, 768, %s22_s27, [#allocation3], %s548_s29, %s548_s29, %s549_s30  }
  0x16   :  { %s550_s13 = smov [#allocation6]  }
  0x17   :  { %s49_s14 = sshll.u32 %s550_s13, 4  ;;  %s50_s14 = int_to_ptr.vmem [resolvable:$true] %s49_s14 }
  0x18   :  { %s530_s15 = scalar_lea.vmem %s50_s14, 4096  ;;  %p535_p11 = scmp.lt.s32.totalorder %s50_s14, %s50_s14 }
  0x19   :  { %p531_p10 = scmp.ne.s32.totalorder %s50_s14, %s530_s15  ;;  %p536_p12 = scmp.lt.s32.totalorder %s530_s15, %s530_s15 }
  0x1b   :  { %p537_p13 = por %p536_p12, %p535_p11 }
  0x1d   :  { %p538_p0 = pnand %p537_p13, %p531_p10 }
  0x1f   :  { %541 = shalt.err (!%p538_p0)
}
  0x20   :  { %s551_s3 = smov 128   ;;  %s552_s16 = smov 8  }
  0x21   :  { %55 = dma.hbm_to_vmem [thread:$0]  %s623_s5, 4096, %s50_s14, [#allocation5], %s551_s3, %s551_s3, %s552_s16  }
  0x22   :  { %542 = dma.done.wait [#allocation3], 768  }
  0x23   :  { %543 = vsyncadd [#allocation3], 4294966528 }
  0x24   :  { %544 = dma.done.wait [#allocation5], 12288  }
  0x25   :  { %545 = vsyncadd [#allocation5], 4294955008  ;;  %v553_v0 = vmov 0.0   ;;  %v73_v1 = vld [vmem:[#allocation2 + $0x28] sm:$0xff]  ;;  %v72_v2 = vld [vmem:[#allocation2 + $0x20] sm:$0xff]  ;;  %vm86_vm0 = vcmask 195584  }
  0x26   :  { %154 = vmatprep.mubr.f32.mxu0 %v553_v0  ;;  %v71_v3 = vld [vmem:[#allocation2 + $0x18] sm:$0xff]  ;;  %116 = vmatprep.subr.mxu0 %v73_v1  ;;  %v70_v4 = vld [vmem:[#allocation2 + $0x10] sm:$0xff]  ;;  %v69_v5 = vld [vmem:[#allocation2 + $0x8] sm:$0xff] }
  0x27   :  { %117 = vmatpush1.msra.mxu0 %v72_v2  ;;  %v194_v6 = vld [vmem:[#allocation4 + $0xf8] sm:$0xff]  ;;  %v193_v7 = vld [vmem:[#allocation4 + $0xf0] sm:$0xff]  ;;  %v192_v9 = vld [vmem:[#allocation4 + $0xe8] sm:$0xff] }
  0x28   :  { %118 = vmatprep.subr.mxu0 %v71_v3  ;;  %v68_v8 = vld [vmem:[#allocation2] sm:$0xff]  ;;  %239 = vmatprep.subr.mxu1 %v194_v6  ;;  %v191_v10 = vld [vmem:[#allocation4 + $0xe0] sm:$0xff]  ;;  %v190_v12 = vld [vmem:[#allocation4 + $0xd8] sm:$0xff] }
  0x29   :  { %119 = vmatpush1.msra.mxu0 %v70_v4  ;;  %v67_v11 = vld [vmem:[%s618_s0] sm:$0xff]  ;;  %240 = vmatpush1.msra.mxu1 %v193_v7  ;;  %v188_v14 = vld [vmem:[#allocation4 + $0xc8] sm:$0xff]  ;;  %v187_v15 = vld [vmem:[#allocation4 + $0xc0] sm:$0xff] }
  0x2a   :  { %120 = vmatprep.subr.mxu0 %v69_v5  ;;  %241 = vmatprep.subr.mxu1 %v192_v9  ;;  %v189_v13 = vld [vmem:[#allocation4 + $0xd0] sm:$0xff]  ;;  %v186_v16 = vld [vmem:[#allocation4 + $0xb8] sm:$0xff]  ;;  %v184_v18 = vld [vmem:[#allocation4 + $0xa8] sm:$0xff] }
  0x2b   :  { %121 = vmatpush1.msra.mxu0 %v68_v8  ;;  %242 = vmatpush1.msra.mxu1 %v191_v10  ;;  %v185_v17 = vld [vmem:[#allocation4 + $0xb0] sm:$0xff]  ;;  %v183_v19 = vld [vmem:[#allocation4 + $0xa0] sm:$0xff]  ;;  %v182_v20 = vld [vmem:[#allocation4 + $0x98] sm:$0xff] }
  0x2c   :  { %435 = vmatmul.mubr.msk.f32.vlgmr.msra.gmra.mxu0 %vm86_vm0, %v67_v11  ;;  %243 = vmatprep.subr.mxu1 %v190_v12  ;;  %v181_v21 = vld [vmem:[#allocation4 + $0x90] sm:$0xff]  ;;  %v180_v22 = vld [vmem:[#allocation4 + $0x88] sm:$0xff]  ;;  %v179_v23 = vld [vmem:[#allocation4 + $0x80] sm:$0xff] }
  0x2d   :  { %244 = vmatpush1.msra.mxu1 %v189_v13  ;;  %v178_v24 = vld [vmem:[#allocation4 + $0x78] sm:$0xff]  ;;  %v177_v25 = vld [vmem:[#allocation4 + $0x70] sm:$0xff]  ;;  %v176_v26 = vld [vmem:[#allocation4 + $0x68] sm:$0xff] }
  0x2e   :  { %245 = vmatprep.subr.mxu1 %v188_v14  ;;  %v175_v27 = vld [vmem:[#allocation4 + $0x60] sm:$0xff]  ;;  %v174_v28 = vld [vmem:[#allocation4 + $0x58] sm:$0xff]  ;;  %v173_v29 = vld [vmem:[#allocation4 + $0x50] sm:$0xff] }
  0x2f   :  { %246 = vmatpush1.msra.mxu1 %v187_v15  ;;  %v172_v30 = vld [vmem:[#allocation4 + $0x48] sm:$0xff]  ;;  %v171_v31 = vld [vmem:[#allocation4 + $0x40] sm:$0xff]  ;;  %v170_v32 = vld [vmem:[#allocation4 + $0x38] sm:$0xff] }
  0x30   :  { %247 = vmatprep.subr.mxu1 %v186_v16  ;;  %v169_v33 = vld [vmem:[#allocation4 + $0x30] sm:$0xff]  ;;  %v168_v34 = vld [vmem:[#allocation4 + $0x28] sm:$0xff]  ;;  %v167_v35 = vld [vmem:[#allocation4 + $0x20] sm:$0xff] }
  0x31   :  { %248 = vmatpush1.msra.mxu1 %v185_v17  ;;  %v166_v36 = vld [vmem:[#allocation4 + $0x18] sm:$0xff]  ;;  %v165_v37 = vld [vmem:[#allocation4 + $0x10] sm:$0xff]  ;;  %v164_v38 = vld [vmem:[#allocation4 + $0x8] sm:$0xff] }
  0x32   :  { %249 = vmatprep.subr.mxu1 %v184_v18  ;;  %v163_v39 = vld [vmem:[#allocation4] sm:$0xff]  ;;  %v226_v40 = vld [vmem:[#allocation4 + $0x1f8] sm:$0xff]  ;;  %v225_v41 = vld [vmem:[#allocation4 + $0x1f0] sm:$0xff] }
  0x33   :  { %250 = vmatpush1.msra.mxu1 %v183_v19  ;;  %v224_v42 = vld [vmem:[#allocation4 + $0x1e8] sm:$0xff]  ;;  %v223_v43 = vld [vmem:[#allocation4 + $0x1e0] sm:$0xff]  ;;  %v222_v44 = vld [vmem:[#allocation4 + $0x1d8] sm:$0xff] }
  0x34   :  { %251 = vmatprep.subr.mxu1 %v182_v20  ;;  %v221_v45 = vld [vmem:[#allocation4 + $0x1d0] sm:$0xff]  ;;  %v220_v46 = vld [vmem:[#allocation4 + $0x1c8] sm:$0xff]  ;;  %v219_v47 = vld [vmem:[#allocation4 + $0x1c0] sm:$0xff] }
  0x35   :  { %252 = vmatpush1.msra.mxu1 %v181_v21  ;;  %v218_v48 = vld [vmem:[#allocation4 + $0x1b8] sm:$0xff]  ;;  %v217_v49 = vld [vmem:[#allocation4 + $0x1b0] sm:$0xff]  ;;  %v216_v50 = vld [vmem:[#allocation4 + $0x1a8] sm:$0xff] }
  0x36   :  { %253 = vmatprep.subr.mxu1 %v180_v22  ;;  %v215_v51 = vld [vmem:[#allocation4 + $0x1a0] sm:$0xff]  ;;  %v214_v52 = vld [vmem:[#allocation4 + $0x198] sm:$0xff]  ;;  %v213_v53 = vld [vmem:[#allocation4 + $0x190] sm:$0xff] }
  0x37   :  { %254 = vmatpush1.msra.mxu1 %v179_v23  ;;  %v212_v54 = vld [vmem:[#allocation4 + $0x188] sm:$0xff]  ;;  %v211_v55 = vld [vmem:[#allocation4 + $0x180] sm:$0xff]  ;;  %v210_v56 = vld [vmem:[#allocation4 + $0x178] sm:$0xff] }
  0x38   :  { %255 = vmatprep.subr.mxu1 %v178_v24  ;;  %v209_v57 = vld [vmem:[#allocation4 + $0x170] sm:$0xff]  ;;  %v208_v58 = vld [vmem:[#allocation4 + $0x168] sm:$0xff]  ;;  %v207_v59 = vld [vmem:[#allocation4 + $0x160] sm:$0xff] }
  0x39   :  { %256 = vmatpush1.msra.mxu1 %v177_v25  ;;  %v206_v60 = vld [vmem:[#allocation4 + $0x158] sm:$0xff]  ;;  %v205_v61 = vld [vmem:[#allocation4 + $0x150] sm:$0xff]  ;;  %v204_v62 = vld [vmem:[#allocation4 + $0x148] sm:$0xff] }
  0x3a   :  { %257 = vmatprep.subr.mxu1 %v176_v26  ;;  %v203_v63 = vld [vmem:[#allocation4 + $0x140] sm:$0xff]  ;;  %v202_v0 = vld [vmem:[#allocation4 + $0x138] sm:$0xff]  ;;  %v201_v1 = vld [vmem:[#allocation4 + $0x130] sm:$0xff] }
  0x3b   :  { %258 = vmatpush1.msra.mxu1 %v175_v27  ;;  %v200_v2 = vld [vmem:[#allocation4 + $0x128] sm:$0xff]  ;;  %v199_v3 = vld [vmem:[#allocation4 + $0x120] sm:$0xff]  ;;  %v198_v4 = vld [vmem:[#allocation4 + $0x118] sm:$0xff] }
  0x3c   :  { %259 = vmatprep.subr.mxu1 %v174_v28  ;;  %v197_v5 = vld [vmem:[#allocation4 + $0x110] sm:$0xff]  ;;  %v196_v6 = vld [vmem:[#allocation4 + $0x108] sm:$0xff]  ;;  %v195_v7 = vld [vmem:[#allocation4 + $0x100] sm:$0xff] }
  0x3d   :  { %260 = vmatpush1.msra.mxu1 %v173_v29  ;;  %v343_v8 = vld [vmem:[#allocation6 + $0xf8] sm:$0xff]  ;;  %v342_v10 = vld [vmem:[#allocation6 + $0xf0] sm:$0xff]  ;;  %v341_v12 = vld [vmem:[#allocation6 + $0xe8] sm:$0xff] }
  0x3e   :  { %261 = vmatprep.subr.mxu1 %v172_v30  ;;  %v327_v9 = vld [vmem:[#allocation6 + $0x78] sm:$0xff]  ;;  %437 = vmatprep.subr.mxu0 %v343_v8  ;;  %v326_v11 = vld [vmem:[#allocation6 + $0x70] sm:$0xff]  ;;  %v325_v13 = vld [vmem:[#allocation6 + $0x68] sm:$0xff] }
  0x3f   :  { %262 = vmatpush1.msra.mxu1 %v171_v31  ;;  %438 = vmatpush3.msra.mxu0 %v327_v9  ;;  %v340_v14 = vld [vmem:[#allocation6 + $0xe0] sm:$0xff]  ;;  %v339_v16 = vld [vmem:[#allocation6 + $0xd8] sm:$0xff]  ;;  %v338_v18 = vld [vmem:[#allocation6 + $0xd0] sm:$0xff] }
  0x40   :  { %263 = vmatprep.subr.mxu1 %v170_v32  ;;  %439 = vmatprep.subr.mxu0 %v342_v10  ;;  %v324_v15 = vld [vmem:[#allocation6 + $0x60] sm:$0xff]  ;;  %v323_v17 = vld [vmem:[#allocation6 + $0x58] sm:$0xff]  ;;  %v322_v19 = vld [vmem:[#allocation6 + $0x50] sm:$0xff]  ;;  %v76_v32 = vlaneseq }
  0x41   :  { %264 = vmatpush1.msra.mxu1 %v169_v33  ;;  %440 = vmatpush3.msra.mxu0 %v326_v11  ;;  %v337_v20 = vld [vmem:[#allocation6 + $0xc8] sm:$0xff]  ;;  %v336_v22 = vld [vmem:[#allocation6 + $0xc0] sm:$0xff]  ;;  %v335_v24 = vld [vmem:[#allocation6 + $0xb8] sm:$0xff] }
  0x42   :  { %265 = vmatprep.subr.mxu1 %v168_v34  ;;  %441 = vmatprep.subr.mxu0 %v341_v12  ;;  %v321_v21 = vld [vmem:[#allocation6 + $0x48] sm:$0xff]  ;;  %v320_v23 = vld [vmem:[#allocation6 + $0x40] sm:$0xff]  ;;  %v319_v25 = vld [vmem:[#allocation6 + $0x38] sm:$0xff]  ;;  %v77_v33 = vshrl.u32 %v76_v32, 7 }
  0x43   :  { %266 = vmatpush1.msra.mxu1 %v167_v35  ;;  %442 = vmatpush3.msra.mxu0 %v325_v13  ;;  %v334_v26 = vld [vmem:[#allocation6 + $0xb0] sm:$0xff]  ;;  %v333_v28 = vld [vmem:[#allocation6 + $0xa8] sm:$0xff]  ;;  %v332_v30 = vld [vmem:[#allocation6 + $0xa0] sm:$0xff] }
  0x44   :  { %267 = vmatprep.subr.mxu1 %v166_v36  ;;  %443 = vmatprep.subr.mxu0 %v340_v14  ;;  %v318_v27 = vld [vmem:[#allocation6 + $0x30] sm:$0xff]  ;;  %v317_v29 = vld [vmem:[#allocation6 + $0x28] sm:$0xff]  ;;  %v316_v31 = vld [vmem:[#allocation6 + $0x20] sm:$0xff]  ;;  %v78_v34 = vsub.s32 0, %v77_v33  ;;  %v82_v36 = vsub.s32 1, %v77_v33 }
  0x45   :  { %268 = vmatpush1.msra.mxu1 %v165_v37  ;;  %444 = vmatpush3.msra.mxu0 %v324_v15  ;;  %v74_v35 = vld [vmem:[%s620_s2] sm:$0x3] }
  0x46   :  { %269 = vmatprep.subr.mxu1 %v164_v38  ;;  %445 = vmatprep.subr.mxu0 %v339_v16  ;;  %v79_v37 = vrot.slane %v74_v35, %v78_v34  ;;  %v83_v38 = vrot.slane %v74_v35, %v82_v36 }
  0x47   :  { %270 = vmatpush1.msra.mxu1 %v163_v39  ;;  %446 = vmatpush3.msra.mxu0 %v323_v17 }
  0x48   :  { %271 = vmatprep.subr.mxu1 %v226_v40  ;;  %447 = vmatprep.subr.mxu0 %v338_v18 }
  0x49   :  { %272 = vmatpush2.msra.mxu1 %v225_v41  ;;  %448 = vmatpush3.msra.mxu0 %v322_v19 }
  0x4a   :  { %273 = vmatprep.subr.mxu1 %v224_v42  ;;  %449 = vmatprep.subr.mxu0 %v337_v20 }
  0x4b   :  { %274 = vmatpush2.msra.mxu1 %v223_v43  ;;  %450 = vmatpush3.msra.mxu0 %v321_v21 }
  0x4c   :  { %275 = vmatprep.subr.mxu1 %v222_v44  ;;  %451 = vmatprep.subr.mxu0 %v336_v22 }
  0x4d   :  { %276 = vmatpush2.msra.mxu1 %v221_v45  ;;  %452 = vmatpush3.msra.mxu0 %v320_v23  ;;  %v331_v45 = vld [vmem:[#allocation6 + $0x98] sm:$0xff] }
  0x4e   :  { %277 = vmatprep.subr.mxu1 %v220_v46  ;;  %453 = vmatprep.subr.mxu0 %v335_v24  ;;  %v315_v46 = vld [vmem:[#allocation6 + $0x18] sm:$0xff] }
  0x4f   :  { %278 = vmatpush2.msra.mxu1 %v219_v47  ;;  %454 = vmatpush3.msra.mxu0 %v319_v25  ;;  %v330_v47 = vld [vmem:[#allocation6 + $0x90] sm:$0xff] }
  0x50   :  { %279 = vmatprep.subr.mxu1 %v218_v48  ;;  %455 = vmatprep.subr.mxu0 %v334_v26  ;;  %v314_v48 = vld [vmem:[#allocation6 + $0x10] sm:$0xff] }
  0x51   :  { %280 = vmatpush2.msra.mxu1 %v217_v49  ;;  %456 = vmatpush3.msra.mxu0 %v318_v27  ;;  %v329_v49 = vld [vmem:[#allocation6 + $0x88] sm:$0xff] }
  0x52   :  { %281 = vmatprep.subr.mxu1 %v216_v50  ;;  %457 = vmatprep.subr.mxu0 %v333_v28  ;;  %v313_v50 = vld [vmem:[#allocation6 + $0x8] sm:$0xff] }
  0x53   :  { %282 = vmatpush2.msra.mxu1 %v215_v51  ;;  %458 = vmatpush3.msra.mxu0 %v317_v29  ;;  %v328_v51 = vld [vmem:[#allocation6 + $0x80] sm:$0xff] }
  0x54   :  { %283 = vmatprep.subr.mxu1 %v214_v52  ;;  %459 = vmatprep.subr.mxu0 %v332_v30  ;;  %v312_v52 = vld [vmem:[#allocation6] sm:$0xff] }
  0x55   :  { %284 = vmatpush2.msra.mxu1 %v213_v53  ;;  %460 = vmatpush3.msra.mxu0 %v316_v31  ;;  %v227_v53 = vld [vmem:[%s622_s4] sm:$0x3] }
  0x56   :  { %285 = vmatprep.subr.mxu1 %v212_v54  ;;  %461 = vmatprep.subr.mxu0 %v331_v45  ;;  %v232_v54 = vrot.slane %v227_v53, %v78_v34 }
  0x57   :  { %286 = vmatpush2.msra.mxu1 %v211_v55  ;;  %462 = vmatpush3.msra.mxu0 %v315_v46  ;;  %v236_v55 = vrot.slane %v227_v53, %v82_v36 }
  0x58   :  { %287 = vmatprep.subr.mxu1 %v210_v56  ;;  %463 = vmatprep.subr.mxu0 %v330_v47 }
  0x59   :  { %288 = vmatpush2.msra.mxu1 %v209_v57  ;;  %464 = vmatpush3.msra.mxu0 %v314_v48 }
  0x5a   :  { %289 = vmatprep.subr.mxu1 %v208_v58  ;;  %465 = vmatprep.subr.mxu0 %v329_v49 }
  0x5b   :  { %290 = vmatpush2.msra.mxu1 %v207_v59  ;;  %466 = vmatpush3.msra.mxu0 %v313_v50 }
  0x5c   :  { %291 = vmatprep.subr.mxu1 %v206_v60  ;;  %467 = vmatprep.subr.mxu0 %v328_v51 }
  0x5d   :  { %292 = vmatpush2.msra.mxu1 %v205_v61  ;;  %468 = vmatpush3.msra.mxu0 %v312_v52 }
  0x5e   :  { %293 = vmatprep.subr.mxu1 %v204_v62 }
  0x5f   :  { %294 = vmatpush2.msra.mxu1 %v203_v63  ;;  %v436_v63 = vld [vmem:[%s624_s6] ss:$0 sm:$0xff] }
  0x60   :  { %295 = vmatprep.subr.mxu1 %v202_v0 }
  0x61   :  { %296 = vmatpush2.msra.mxu1 %v201_v1 }
  0x62   :  { %297 = vmatprep.subr.mxu1 %v200_v2 }
  0x63   :  { %298 = vmatpush2.msra.mxu1 %v199_v3  ;;  %v422_v3 = vand.u32 127, %v76_v32 }
  0x64   :  { %299 = vmatprep.subr.mxu1 %v198_v4 }
  0x65   :  { %300 = vmatpush2.msra.mxu1 %v197_v5  ;;  %vm426_vm1 = vcmp.ge.s32.totalorder %v422_v3, 64 }
  0x66   :  { %301 = vmatprep.subr.mxu1 %v196_v6 }
  0x67   :  { %302 = vmatpush2.msra.mxu1 %v195_v7 }
  0xec   :  { %v156_v39 = vpop.f32.mrf.mxu0 }
  0xed   :  { %v157_v40 = vadd.f32 %v156_v39, %v79_v37 }
  0xee   :  { %v158_v41 = vpop.f32.mrf.mxu0 }
  0xef   :  { %v159_v42 = vadd.f32 %v158_v41, %v83_v38  ;;  %v161_v44 = vmax.f32 %v157_v40, 0.0 }
  0xf1   :  { %v162_v43 = vmax.f32 %v159_v42, 0.0 }
  0xf3   :  { %303 = vmatprep.mubr.f32.mxu1 %v162_v43 }
  0xf4   :  { %304 = vmatmul.mubr.f32.vlgmr.msra.gmra.mxu1 %v161_v44 }
 0x1b4   :  { %v305_v56 = vpop.f32.mrf.mxu1 }
 0x1b5   :  { %v306_v57 = vadd.f32 %v305_v56, %v232_v54 }
 0x1b6   :  { %v307_v58 = vpop.f32.mrf.mxu1 }
 0x1b7   :  { %v308_v59 = vadd.f32 %v307_v58, %v236_v55  ;;  %v310_v61 = vmax.f32 %v306_v57, 0.0 }
 0x1b9   :  { %v311_v60 = vmax.f32 %v308_v59, 0.0 }
 0x1bb   :  { %415 = vmatprep.mubr.f32.mxu0 %v311_v60 }
 0x1bc   :  { %416 = vmatmul.mubr.f32.vlgmr.msra.gmra.mxu0 %v310_v61 }
 0x27c   :  { %v469_v62 = vpop.f32.mrf.mxu0 }
 0x27e   :  { %v470_v0 = vpop.f32.mrf.mxu0 }
 0x27f   :  { %v471_v1 = vadd.f32 %v470_v0, %v469_v62 }
 0x281   :  { %v418_v2 = vadd.f32 %v471_v1, %v436_v63 }
 0x283   :  { %480 = vtanh.f32 %v418_v2 }
 0x290   :  { %v481_v4 = vpop.eup %480 }
 0x291   :  { %v424_v5 = vmul.f32 3.5, %v481_v4 }
 0x293   :  { %v425_v6 = vadd.f32 -1.5, %v424_v5 }
 0x295   :  { %v427_v7 = vsel %vm426_vm1, %v425_v6, %v418_v2 }
 0x296   :  { %428 = vst [vmem:[%s625_s7] sm:$0xff] %v427_v7 }
 0x297   :  { %433 = vsyncpa [#allocation3], 1 }
 0x298   :  { %434 = vsyncpa [#allocation5], 1 }

</bundles_post_ra>
